<compile_context>
chip_gen: v7x
topology: tpu7x:2x2x1
jax: 0.10.0
libtpu: 0.0.40
codegen_flags: <defaults>
</compile_context>

<pallas_src>
import jax
import jax.numpy as jnp
from jax.experimental import pallas as pl
from jax.experimental.pallas import tpu as pltpu


def _gpb_kernel(x_ref, scale_ref, shift_ref, w_ref, b_ref, o_ref):
    # x_ref block: (TB, C, HW) — spatial axis (HW) is lane-dense, channels on sublanes.
    xf = x_ref[...].astype(jnp.float32)               # (TB, C, HW)

    # Folded BatchNorm (running stats) + ReLU.
    scale = scale_ref[...][None]                      # (1, C, 1)
    shift = shift_ref[...][None]                      # (1, C, 1)
    g = jnp.maximum(xf * scale + shift, 0.0)          # (TB, C, HW)

    # Global mean / max pooling over the spatial (lane) axis.
    mean_p = jnp.mean(g, axis=-1)                     # (TB, C)
    max_p = jnp.max(g, axis=-1)                       # (TB, C)
    pooled = jnp.concatenate([mean_p, max_p], axis=-1)  # (TB, 2C)

    # Single fused Linear(2C -> C): one (TB, 2C) x (2C, C) matmul on the MXU.
    bias = jnp.dot(pooled, w_ref[...], preferred_element_type=jnp.float32) + b_ref[...]

    o_ref[...] = (xf + bias[:, :, None]).astype(o_ref.dtype)


def _choose_tb(B, C, HW, itemsize):
    """Pick batch tile TB: big blocks (amortize ~0.35us/step overhead) but VMEM-safe
    (in + out double-buffered ~= 4 * block bytes; budget works on v7x's 64 MiB too),
    and keep >= 2 grid steps when B allows so v7x megacore can shard the batch axis."""
    budget = 2 << 20  # ~2 MiB per block -> ~8 MiB resident with double-buffering
    tb = 1
    for cand in range(1, B + 1):
        if B % cand == 0 and cand * C * HW * itemsize <= budget:
            tb = cand
    if tb == B and B > 1:
        for cand in range(B // 2, 0, -1):
            if B % cand == 0:
                tb = cand
                break
    return tb


def global_pooling_bias(x, gamma, beta, running_mean, running_var, fc_w, fc_b, eps=1e-5):
    """x: (B, C, H, W). fc_w: (C, 2C) (PyTorch Linear weight), fc_b: (C,)."""
    B, C, H, W = x.shape
    HW = H * W

    # Fold BN (eval-mode) into a per-channel scale/shift (lane-dim-1, f32).
    inv = (gamma / jnp.sqrt(running_var + eps)).astype(jnp.float32)
    scale = inv.reshape(C, 1)
    shift = (beta.astype(jnp.float32) - running_mean.astype(jnp.float32) * inv).reshape(C, 1)

    # One fused weight: bias = pooled @ fc_w.T + fc_b, pooled = [mean ; max].
    fc_wT = fc_w.T.astype(jnp.float32)                 # (2C, C)
    fc_b2 = fc_b.astype(jnp.float32).reshape(1, C)     # (1, C)

    # Flatten spatial dims in the wrapper so the kernel's last dim is lane-dense.
    xf = x.reshape(B, C, HW)

    tb = _choose_tb(B, C, HW, x.dtype.itemsize)
    grid = (B // tb,)

    cost = pl.CostEstimate(
        flops=int(4 * B * C * HW + 2 * B * (2 * C) * C),
        transcendentals=0,
        bytes_accessed=int(2 * B * C * HW * x.dtype.itemsize),
    )

    out = pl.pallas_call(
        _gpb_kernel,
        out_shape=jax.ShapeDtypeStruct((B, C, HW), x.dtype),
        grid_spec=pltpu.PrefetchScalarGridSpec(
            num_scalar_prefetch=0,
            grid=grid,
            in_specs=[
                pl.BlockSpec((tb, C, HW), lambda b: (b, 0, 0)),   # x
                pl.BlockSpec((C, 1), lambda b: (0, 0)),           # BN scale
                pl.BlockSpec((C, 1), lambda b: (0, 0)),           # BN shift
                pl.BlockSpec((2 * C, C), lambda b: (0, 0)),       # fc weight^T
                pl.BlockSpec((1, C), lambda b: (0, 0)),           # fc bias
            ],
            out_specs=pl.BlockSpec((tb, C, HW), lambda b: (b, 0, 0)),
        ),
        compiler_params=pltpu.CompilerParams(dimension_semantics=("parallel",)),
        cost_estimate=cost,
    )(xf, scale, shift, fc_wT, fc_b2)

    return out.reshape(B, C, H, W)


def _reference(x, gamma, beta, running_mean, running_var, fc_w, fc_b, eps=1e-5):
    inv = gamma / jnp.sqrt(running_var + eps)
    g = jnp.maximum(
        x * inv[None, :, None, None] + (beta - running_mean * inv)[None, :, None, None], 0.0
    )
    mean_p = jnp.mean(g, axis=(2, 3))                   # (B, C)
    max_p = jnp.max(g, axis=(2, 3))                     # (B, C)
    pooled = jnp.concatenate([mean_p, max_p], axis=1)   # (B, 2C)
    bias = pooled @ fc_w.T + fc_b                       # (B, C)
    return x + bias[:, :, None, None]


if __name__ == "__main__":
    B, C, H, W = 2, 4, 16, 16
    key = jax.random.PRNGKey(0)
    kx, kg, kb, km, kv, kw, kfb = jax.random.split(key, 7)

    x = jax.random.normal(kx, (B, C, H, W), dtype=jnp.float32)
    gamma = jax.random.normal(kg, (C,), dtype=jnp.float32) * 0.1 + 1.0
    beta = jax.random.normal(kb, (C,), dtype=jnp.float32) * 0.1
    running_mean = jax.random.normal(km, (C,), dtype=jnp.float32) * 0.1
    running_var = jnp.abs(jax.random.normal(kv, (C,), dtype=jnp.float32)) + 0.5
    fc_w = jax.random.normal(kw, (C, 2 * C), dtype=jnp.float32) * 0.1  # Linear(2C, C).weight
    fc_b = jax.random.normal(kfb, (C,), dtype=jnp.float32) * 0.1       # Linear(2C, C).bias

    out = global_pooling_bias(x, gamma, beta, running_mean, running_var, fc_w, fc_b)
    out = jax.block_until_ready(out)

    ref = _reference(x, gamma, beta, running_mean, running_var, fc_w, fc_b)
    assert out.shape == (B, C, H, W)
    assert jnp.allclose(out, ref, atol=1e-4, rtol=1e-4), "mismatch vs reference"

    print("KERNEL_OK")
</pallas_src>

<mosaic_0001>
module attributes {stable_mosaic.version = 11 : i64} {
  func.func @_gpb_kernel(%arg0: i32, %arg1: memref<1x4x256xf32, #tpu.memory_space<vmem>>, %arg2: memref<4x1xf32, #tpu.memory_space<vmem>>, %arg3: memref<4x1xf32, #tpu.memory_space<vmem>>, %arg4: memref<8x4xf32, #tpu.memory_space<vmem>>, %arg5: memref<1x4xf32, #tpu.memory_space<vmem>>, %arg6: memref<1x4x256xf32, #tpu.memory_space<vmem>>) attributes {dimension_semantics = [#tpu.dimension_semantics<parallel>], iteration_bounds = array<i64: 2>, scalar_prefetch = 0 : i64, scratch_operands = 0 : i64, tpu.core_type = #tpu.core_type<tc>, window_params = [{transform_indices = @transform_0, window_bounds = array<i64: 1, 4, 256>}, {pipeline_mode = #tpu.pipeline_mode<synchronous>, transform_indices = @transform_1, window_bounds = array<i64: 4, 1>}, {pipeline_mode = #tpu.pipeline_mode<synchronous>, transform_indices = @transform_2, window_bounds = array<i64: 4, 1>}, {pipeline_mode = #tpu.pipeline_mode<synchronous>, transform_indices = @transform_3, window_bounds = array<i64: 8, 4>}, {pipeline_mode = #tpu.pipeline_mode<synchronous>, transform_indices = @transform_4, window_bounds = array<i64: 1, 4>}, {transform_indices = @transform_5, window_bounds = array<i64: 1, 4, 256>}]} {
    %c0 = arith.constant 0 : index
    %c0_0 = arith.constant 0 : index
    %c0_1 = arith.constant 0 : index
    %0 = vector.load %arg1[%c0, %c0_0, %c0_1] : memref<1x4x256xf32, #tpu.memory_space<vmem>>, vector<1x4x256xf32>
    %c0_2 = arith.constant 0 : index
    %c0_3 = arith.constant 0 : index
    %1 = vector.load %arg2[%c0_2, %c0_3] : memref<4x1xf32, #tpu.memory_space<vmem>>, vector<4x1xf32>
    %2 = vector.shape_cast %1 : vector<4x1xf32> to vector<1x4x1xf32>
    %c0_4 = arith.constant 0 : index
    %c0_5 = arith.constant 0 : index
    %3 = vector.load %arg3[%c0_4, %c0_5] : memref<4x1xf32, #tpu.memory_space<vmem>>, vector<4x1xf32>
    %4 = vector.shape_cast %3 : vector<4x1xf32> to vector<1x4x1xf32>
    %5 = vector.broadcast %2 : vector<1x4x1xf32> to vector<1x4x256xf32>
    %6 = arith.mulf %0, %5 : vector<1x4x256xf32>
    %7 = vector.broadcast %4 : vector<1x4x1xf32> to vector<1x4x256xf32>
    %8 = arith.addf %6, %7 : vector<1x4x256xf32>
    %cst = arith.constant 0.000000e+00 : f32
    %9 = vector.broadcast %cst : f32 to vector<1x4x256xf32>
    %10 = arith.maximumf %8, %9 : vector<1x4x256xf32>
    %cst_6 = arith.constant dense<0.000000e+00> : vector<1x4xf32>
    %11 = vector.multi_reduction <add>, %10, %cst_6 [2] : vector<1x4x256xf32> to vector<1x4xf32>
    %cst_7 = arith.constant 2.560000e+02 : f32
    %12 = vector.broadcast %cst_7 : f32 to vector<1x4xf32>
    %13 = arith.divf %11, %12 : vector<1x4xf32>
    %cst_8 = arith.constant dense<0xFF800000> : vector<1x4xf32>
    %14 = vector.multi_reduction <maximumf>, %10, %cst_8 [2] : vector<1x4x256xf32> to vector<1x4xf32>
    %15 = tpu.concatenate %13, %14 in 1 : vector<1x4xf32>, vector<1x4xf32> -> vector<1x8xf32>
    %c0_9 = arith.constant 0 : index
    %c0_10 = arith.constant 0 : index
    %16 = vector.load %arg4[%c0_9, %c0_10] : memref<8x4xf32, #tpu.memory_space<vmem>>, vector<8x4xf32>
    %cst_11 = arith.constant dense<0.000000e+00> : vector<1x4xf32>
    %17 = tpu.matmul %15, %16, %cst_11 {dimension_numbers = #tpu.dot_dimension_numbers<[1], [0], [0], [1], [0, 0, 1, 1], [], []>} : vector<1x8xf32>, vector<8x4xf32>, vector<1x4xf32> -> vector<1x4xf32>
    %c0_12 = arith.constant 0 : index
    %c0_13 = arith.constant 0 : index
    %18 = vector.load %arg5[%c0_12, %c0_13] : memref<1x4xf32, #tpu.memory_space<vmem>>, vector<1x4xf32>
    %19 = arith.addf %17, %18 : vector<1x4xf32>
    %20 = vector.shape_cast %19 : vector<1x4xf32> to vector<1x4x1xf32>
    %21 = vector.broadcast %20 : vector<1x4x1xf32> to vector<1x4x256xf32>
    %22 = arith.addf %0, %21 : vector<1x4x256xf32>
    %c0_14 = arith.constant 0 : index
    %c0_15 = arith.constant 0 : index
    %c0_16 = arith.constant 0 : index
    %23 = vector.load %arg6[%c0_14, %c0_15, %c0_16] : memref<1x4x256xf32, #tpu.memory_space<vmem>>, vector<1x4x256xf32>
    tpu.vector_store %arg6[%c0_14, %c0_15, %c0_16], %22 {strides = array<i32>} : memref<1x4x256xf32, #tpu.memory_space<vmem>>, vector<1x4x256xf32>,
    return
  }
  func.func @transform_0(%arg0: i32) -> (i32, i32, i32) {
    %c0_i32 = arith.constant 0 : i32
    %c0_i32_0 = arith.constant 0 : i32
    %c0_i32_1 = arith.constant 0 : i32
    return %arg0, %c0_i32, %c0_i32_0 : i32, i32, i32
  }
  func.func @transform_1(%arg0: i32) -> (i32, i32) {
    %c0_i32 = arith.constant 0 : i32
    %c0_i32_0 = arith.constant 0 : i32
    %c0_i32_1 = arith.constant 0 : i32
    return %c0_i32, %c0_i32_0 : i32, i32
  }
  func.func @transform_2(%arg0: i32) -> (i32, i32) {
    %c0_i32 = arith.constant 0 : i32
    %c0_i32_0 = arith.constant 0 : i32
    %c0_i32_1 = arith.constant 0 : i32
    return %c0_i32, %c0_i32_0 : i32, i32
  }
  func.func @transform_3(%arg0: i32) -> (i32, i32) {
    %c0_i32 = arith.constant 0 : i32
    %c0_i32_0 = arith.constant 0 : i32
    %c0_i32_1 = arith.constant 0 : i32
    return %c0_i32, %c0_i32_0 : i32, i32
  }
  func.func @transform_4(%arg0: i32) -> (i32, i32) {
    %c0_i32 = arith.constant 0 : i32
    %c0_i32_0 = arith.constant 0 : i32
    %c0_i32_1 = arith.constant 0 : i32
    return %c0_i32, %c0_i32_0 : i32, i32
  }
  func.func @transform_5(%arg0: i32) -> (i32, i32, i32) {
    %c0_i32 = arith.constant 0 : i32
    %c0_i32_0 = arith.constant 0 : i32
    %c0_i32_1 = arith.constant 0 : i32
    return %arg0, %c0_i32, %c0_i32_0 : i32, i32, i32
  }
}

</mosaic_0001>

<bundles_post_ra>
// kernel: tpu_custom_call.1
= control target key start
LH: loop header
LB: loop body
LE: loop exit
PB: predicated region body
PF: predicated region fallthrough
CT: control target
= control target key end

     0   :  { %10 = vsyncpa [#allocation3], 0  ;;  %s731_s0 = inlined_call_operand.vmem [shape: f32[2,4,256], index: 0, kind: input, shape index: {}]   ;;  %s732_s1 = inlined_call_operand.vmem [shape: f32[4,1], index: 1, kind: input, shape index: {}]   ;;  %s733_s2 = inlined_call_operand.vmem [shape: f32[4,1], index: 2, kind: input, shape index: {}]   ;;  %s734_s3 = inlined_call_operand.vmem [shape: f32[8,4], index: 3, kind: input, shape index: {}]   ;;  %s735_s4 = inlined_call_operand.vmem [shape: f32[1,4], index: 4, kind: input, shape index: {}]   ;;  %s736_s5 = inlined_call_operand.hbm [shape: f32[2,4,256], index: 5, kind: output, shape index: {}]  }
   0x1   :  { %12 = vsyncpa [#allocation3 + $0x1], 0  ;;  %s619_s18 = smov 0   ;;  %s621_s19 = smov 0  }
   0x2   :  { %s623_s20 = smov 0   ;;  %s625_s21 = smov 0  }
   0x3 LB: > { %s640_s22 = sadd.s32 4294967295, %s582_s21   ;;  %s454_s23 = sadd.s32 4294967294, %s582_s21   ;;  %s582_s21 = sphi %s625_s21, %s742_s21   ;;  %s578_s20 = sphi %s623_s20, %s741_s20   ;;  %s574_s19 = sphi %s621_s19, %s740_s19   ;;  %s570_s18 = sphi %s619_s18, %s739_s18  }
   0x4   : > { %s644_s24 = sadd.s32 1, %s582_s21   ;;  %s135_s25 = sadd.s32 1, %s578_s20 }
   0x5   : > { %s132_s26 = ssub.s32 %s582_s21, %s644_s24  ;;  %p145_p0 = scmp.ne.s32.totalorder %s578_s20, %s574_s19 }
   0x6   : > { %p133_p1 = scmp.eq.s32.totalorder %s132_s26, 0  ;;  %p146_p2 = scmp.eq.s32.totalorder %s640_s22, 1 }
   0x7   : > { %p151_p3 = scmp.ne.s32.totalorder %s574_s19, %s570_s18  ;;  %p152_p4 = scmp.eq.s32.totalorder %s454_s23, 1 }
   0x8   : > { %s655_s27 = scalar_select %p133_p1, %s578_s20, %s135_s25  }
   0x9   : > { %p657_p5 = por %p146_p2, %p145_p0  ;;  %p661_p6 = por %p152_p4, %p151_p3 }
   0xa   : > { %p457_p7 = scmp.ge.s32.totalorder %s582_s21, 1  ;;  %p190_p8 = scmp.lt.s32.totalorder %s582_s21, 3 }
   0xc   : > { %p191_p9 = pnand %p457_p7, %p190_p8 }
   0xd   : > { %v224_v0 = vld [vmem:[%s732_s1] sm:$0xf] (!%p191_p9)  ;;  %v584_v1 = vmov (!%p191_p9), 0   ;;  %p218_p10 = scmp.lt.s32.totalorder (!%p191_p9), %s640_s22, 1  ;;  %v585_v3 = vmov (!%p191_p9), 839922192   ;;  %v233_v5 = vlaneseq (!%p191_p9) }
   0xe   : > { %194 = sbr.rel (%p191_p9) target bundleno = 656 (0x290), region = 40  ;;  %519 = vset.pattern.permute.xlu0 (!%p191_p9), %v584_v1  ;;  %v225_v2 = vld [vmem:[%s733_s2] sm:$0xf] (!%p191_p9)  ;;  %v231_v4 = vunpack.c.l.s4 (!%p191_p9), %v585_v3  ;;  %vm256_vm0 = vcmask (!%p191_p9), 1043456   ;;  %v586_v25 = vmov (!%p191_p9), 0.0   ;;  %vm587_vm1 = vmmov (!%p191_p9), 0  }
   0xf   : > { %228 = vperm.xlu0 (!%p191_p9), %519, %v224_v0   ;;  %v234_v7 = vshrl.u32 (!%p191_p9), %v233_v5, 7  ;;  %v286_v24 = vld [vmem:[%s734_s3] sm:$0xff] (!%p191_p9)  ;;  %471 = vmatprep.subr.mxu0 (!%p191_p9), %v586_v25  ;;  %v271_v26 = vand.u32 (!%p191_p9), 127, %v233_v5  ;;  %vm284_vm2 = vcmask (!%p191_p9), 31744   ;;  %vm288_vm3 = vcmask (!%p191_p9), 64512   ;;  %s215_s23 = sand.u32 (!%p191_p9), 1, %s574_s19  }
  0x10   : > { %v232_v6 = vunpack.c.0.s8 (!%p191_p9), %v231_v4  ;;  %473 = vmatprep.mubr.msk.f32.mxu0 (!%p191_p9), %vm587_vm1, %v586_v25  ;;  %472 = vmatpush3.msra.mxu0 (!%p191_p9), %v286_v24  ;;  %v287_v36 = vld [vmem:[%s735_s4] sm:$0x1] (!%p191_p9)  ;;  %s458_s25 = sshll.u32 (!%p191_p9), %s215_s23, 3  ;;  %s468_s26 = sshll.u32 (!%p191_p9), %s640_s22, 7 }
  0x11   : > { %v278_v27 = vadd.s32 (!%p191_p9), 4294967292, %v271_v26  ;;  %v274_v29 = vsub.s32 (!%p191_p9), %v271_v26, %v234_v7  ;;  %v364_v37 = vsub.s32 (!%p191_p9), 0, %v234_v7  ;;  %s217_s30 = scalar_lea.vmem (!%p191_p9), [#allocation2], %s458_s25 }
  0x12   : > { %v235_v8 = vsub.s32 (!%p191_p9), %v232_v6, %v234_v7  ;;  %s395_s6 = sshll.u32 (!%p191_p9), %s217_s30, 4  ;;  %s691_s6 = int_to_ptr.vmem [resolvable:$true] %s395_s6 }
  0x13   : > { %241 = vperm.xlu0 (!%p191_p9), %519, %v225_v2   ;;  %v281_v31 = vsub.s32 (!%p191_p9), %v278_v27, %v234_v7  ;;  %s520_s11 = scalar_lea.vmem (!%p191_p9), %s691_s6, 128 }
  0x14   : > { %p521_p11 = scmp.ne.s32.totalorder (!%p191_p9), %s691_s6, %s520_s11 }
  0x15   : > { %s219_s9 = scalar_select %p218_p10, %s640_s22, 1 }
  0x16   : > { %p522_p12 = pnand %p521_p11, %p657_p5  ;;  %s588_s22 = smov [#allocation2]  }
  0x17   : > { %s467_s10 = sshll.u32 %s219_s9, 3  ;;  %s689_s9 = scalar_lea.hbm %s736_s5, %s468_s26 }
  0x18   : > { %s222_s13 = scalar_lea.vmem %s731_s0, %s467_s10  ;;  %s381_s10 = scalar_lea.sflag [#allocation3], %s215_s23 }
  0x19   : > { %v223_v11 = vld [vmem:[%s222_s13] sm:$0xff]  ;;  %p523_p13 = pneg %p522_p12  ;;  %s524_s12 = sshll.u32 %s588_s22, 4  ;;  %s525_s12 = int_to_ptr.vmem [resolvable:$false] %s524_s12 }
  0x1a   : > { %s526_s13 = scalar_lea.vmem %s525_s12, 256  ;;  %p527_p0 = scmp.lt.s32.totalorder %s691_s6, %s525_s12 }
  0x1b   : > { %p528_p1 = scmp.lt.s32.totalorder %s526_s13, %s520_s11 }
  0x1d   : > { %p529_p2 = por %p528_p1, %p527_p0 }
  0x1f   : > { %p530_p3 = pnand %p529_p2, %p523_p13 }
  0x8e   : > { %v229_v9 = vpop.permute.xlu0 %228 }
  0x8f   : > { %v236_v10 = vrot.slane %v229_v9, %v235_v8 }
  0x91   : > { %v238_v13 = vmul.f32 %v236_v10, %v223_v11 }
  0x92   : > { %v242_v12 = vpop.permute.xlu0 %241 }
  0x93   : > { %v249_v14 = vrot.slane %v242_v12, %v235_v8 }
  0x95   : > { %v251_v15 = vadd.f32 %v249_v14, %v238_v13 }
  0x97   : > { %v252_v16 = vmax.f32 %v251_v15, 0.0 }
  0x99   : > { %v254_v17 = vcombine.high %v252_v16, %v252_v16  ;;  %v257_v18 = vsel %vm256_vm0, %v252_v16, 0.0  ;;  %v264_v22 = vsel %vm256_vm0, %v252_v16, -inf }
  0x9b   : > { %v258_v19 = vsel %vm256_vm0, %v254_v17, 0.0  ;;  %v265_v21 = vsel %vm256_vm0, %v254_v17, -inf }
  0x9c   : > { %v259_v20 = vadd.f32 %v258_v19, %v257_v18  ;;  %v266_v23 = vmax.f32 %v264_v22, %v265_v21 }
  0x9e   : > { %260 = vadd.xlane.f32.xlu1 %v259_v20 }
  0xa2   : > { %267 = vmax.xlane.f32.xlu1 %v266_v23 }
 0x12b   : > { %v261_v28 = vpop.xlane.xlu1 %260 }
 0x12c   : > { %v263_v30 = vmul.f32 0.00390625, %v261_v28 }
 0x12e   : > { %v275_v33 = vrot.slane %v263_v30, %v274_v29 }
 0x12f   : > { %v268_v32 = vpop.xlane.xlu1 %267 }
 0x130   : > { %v282_v34 = vrot.slane %v268_v32, %v281_v31 }
 0x132   : > { %v285_v35 = vsel %vm284_vm2, %v275_v33, %v282_v34 }
 0x133   : > { %474 = vmatmul.mubr.msk.f32.vlgmr.msra.gmra.mrb[0].mxu0 %vm288_vm3, %v285_v35 }
 0x206   : > { %v358_v38 = vpop.f32.mrb[0].mxu0 }
 0x207   : > { %v359_v39 = vadd.f32 %v358_v38, %v287_v36  ;;  %v475_v40 = vpop.f32.mrb[1].mxu0 }
 0x209   : > { %v365_v41 = vrot.slane %v359_v39, %v364_v37 }
 0x20b   : > { %367 = vbcast.lane.b32.xlu0 %v365_v41, 256 }
 0x27d   : > { %v368_v42 = vpop.permute.xlu0 %367 }
 0x27e   : > { %v376_v43 = vrot.slane %v368_v42, %v235_v8 }
 0x280   : > { %v378_v44 = vadd.f32 %v376_v43, %v223_v11 }
 0x282   : > { %379 = vst [vmem:[%s217_s30] sm:$0xff] %v378_v44 }
 0x283   : > { %533 = shalt.err (!%p530_p3)
}
 0x284   : > { %s534_s14 = scalar_lea.hbm %s689_s9, 128  ;;  %s538_s17 = scalar_lea.hbm %s736_s5, 256 }
 0x285   : > { %p535_p4 = scmp.ne.s32.totalorder %s689_s9, %s534_s14  ;;  %p539_p9 = scmp.lt.u32.totalorder %s689_s9, %s736_s5 }
 0x286   : > { %p540_p10 = scmp.lt.u32.totalorder %s538_s17, %s534_s14  ;;  %p542_p12 = scmp.lt.u32.totalorder %s534_s14, %s689_s9 }
 0x287   : > { %p536_p7 = pnand %p535_p4, %p657_p5 }
 0x288   : > { %p541_p11 = por %p540_p10, %p539_p9 }
 0x289   : > { %p537_p8 = pneg %p536_p7 }
 0x28a   : > { %p543_p13 = por %p542_p12, %p541_p11 }
 0x28c   : > { %p544_p0 = pnand %p543_p13, %p537_p8 }
 0x28e   : > { %547 = shalt.err (!%p544_p0)
}
 0x28f   : > { %476 = dma.vmem_to_hbm [thread:$0]  (%p657_p5), %s691_s6, 128, %s689_s9, %s381_s10  }
 0x290 PF: > { %p482_p1 = scmp.ge.s32.totalorder %s582_s21, 2  ;;  %s407_s26 = sand.u32 1, %s570_s18  }
 0x291   : > { %s408_s30 = scalar_lea.sflag [#allocation3], %s407_s26 }
 0x292   : > { %p479_p2 = pnand %p482_p1, %p661_p6 }
 0x294   : > { %565 = dma.done.wait (!%p479_p2), %s408_s30, 128  }
 0x295   : > { %567 = vsyncadd (!%p479_p2), %s408_s30, 4294967168  ;;  %p15_p3 = scmp.ge.s32.totalorder %s644_s24, 4   ;;  %s739_s18 = smov %s574_s19 }
 0x296   : > { %s740_s19 = smov %s578_s20  ;;  %s741_s20 = smov %s655_s27 }
 0x297   : > { %s742_s21 = smov %s644_s24  ;;  %17 = sbr.rel (!%p15_p3) target bundleno = 3 (0x3), region = 75 }
 0x29e   :  { %413 = vsyncpa [#allocation3], 1 }
 0x29f   :  { %415 = vsyncpa [#allocation3 + $0x1], 1 }

</bundles_post_ra>
